<compile_context>
chip_gen: v7x
topology: tpu7x:2x2x1
jax: 0.10.0
libtpu: 0.0.40
codegen_flags: <defaults>
</compile_context>

<pallas_src>
import functools

import jax
import jax.numpy as jnp
from jax import lax
from jax.experimental import pallas as pl
from jax.experimental.pallas import tpu as pltpu


def attention_kernel(
    x_ref, w_qkv_ref, b_qkv_ref, wo_ref, bo_ref, o_ref,
    *, num_heads, head_dim, block_batch, seq_len, dim,
):
    # Fused QKV projection: one wide bf16 MXU matmul over the whole batch block.
    x = x_ref[...].reshape(block_batch * seq_len, dim).astype(jnp.bfloat16)
    qkv = (
        jnp.dot(x, w_qkv_ref[...], preferred_element_type=jnp.float32)
        + b_qkv_ref[...]
    )  # (Bb*N, 3D) f32; 1/scale is pre-folded into the Q columns/bias.

    for b in range(block_batch):          # static unrolled loop over batch block
        r0 = b * seq_len
        qb = qkv[r0:r0 + seq_len, 0:dim]
        kb = qkv[r0:r0 + seq_len, dim:2 * dim]
        vb = qkv[r0:r0 + seq_len, 2 * dim:3 * dim]

        acc = jnp.zeros((seq_len, dim), jnp.float32)
        for h in range(num_heads):        # static unrolled loop over heads
            lo = h * head_dim
            hi = lo + head_dim
            qh = qb[:, lo:hi].astype(jnp.bfloat16)
            kh = kb[:, lo:hi].astype(jnp.bfloat16)
            vh = vb[:, lo:hi].astype(jnp.bfloat16)

            # q @ k^T without an explicit transpose: contract on last dims.
            scores = lax.dot_general(
                qh, kh, (((1,), (1,)), ((), ())),
                preferred_element_type=jnp.float32,
            )  # (N, N) f32, already scaled by 1/sqrt(head_dim)

            # Numerically stable softmax in f32; normalization on the EUP.
            m = jnp.max(scores, axis=-1, keepdims=True)
            e = jnp.exp(scores - m)
            denom = jnp.sum(e, axis=-1, keepdims=True)
            p = e * pl.reciprocal(denom, approx=True)

            head_out = jnp.dot(
                p.astype(jnp.bfloat16), vh, preferred_element_type=jnp.float32
            )  # (N, hd)

            # Accumulate directly into the output projection (no concatenate).
            acc = acc + jnp.dot(
                head_out.astype(jnp.bfloat16),
                wo_ref[lo:hi, :],
                preferred_element_type=jnp.float32,
            )

        o_ref[b] = (acc + bo_ref[...]).astype(o_ref.dtype)


def attention_forward(x, params, num_heads, block_batch=1):
    B, N, D = x.shape
    head_dim = D // num_heads
    inv_scale = 1.0 / (float(head_dim) ** 0.5)
    wq, bq, wk, bk, wv, bv, wo, bo = params

    # One-time parameter prep outside the kernel: fuse QKV, fold the score
    # scale into Q, cast MXU weight operands to bf16 (biases stay f32).
    w_qkv = jnp.concatenate([wq * inv_scale, wk, wv], axis=1).astype(jnp.bfloat16)
    b_qkv = jnp.concatenate([bq * inv_scale, bk, bv], axis=1).astype(jnp.float32)
    wo_b = wo.astype(jnp.bfloat16)
    bo_f = bo.astype(jnp.float32)

    assert B % block_batch == 0, "block_batch must divide batch"
    grid = (B // block_batch,)

    kernel = functools.partial(
        attention_kernel,
        num_heads=num_heads, head_dim=head_dim,
        block_batch=block_batch, seq_len=N, dim=D,
    )

    # Advisory cost estimate for the XLA scheduler.
    flops = 2 * B * N * D * (3 * D) + 4 * B * N * N * D + 2 * B * N * D * D
    transcendentals = B * num_heads * N * N  # exp
    bytes_accessed = (
        2 * B * N * D * x.dtype.itemsize          # x in + out
        + (w_qkv.size + wo_b.size) * 2            # bf16 weights
        + (b_qkv.size + bo_f.size) * 4            # f32 biases
    )

    # Explicit VMEM budget: double-buffered blocks + resident intermediates,
    # with headroom; clamped so it stays valid on v7x (64 MiB physical).
    vmem_est = 2 * (
        w_qkv.size * 2 + wo_b.size * 2 + (b_qkv.size + bo_f.size) * 4
        + 2 * block_batch * N * D * 4             # x block + out block
    ) + 8 * block_batch * N * (3 * D + N) * 4     # qkv / scores / acc intermediates
    vmem_limit = int(min(max(vmem_est, 8 * 1024 * 1024), 64 * 1024 * 1024))

    return pl.pallas_call(
        kernel,
        out_shape=jax.ShapeDtypeStruct((B, N, D), x.dtype),
        grid=grid,
        in_specs=[
            pl.BlockSpec((block_batch, N, D), lambda i: (i, 0, 0)),  # x
            pl.BlockSpec((D, 3 * D), lambda i: (0, 0)),              # fused W_qkv
            pl.BlockSpec((1, 3 * D), lambda i: (0, 0)),              # fused b_qkv
            pl.BlockSpec((D, D), lambda i: (0, 0)),                  # W_out
            pl.BlockSpec((1, D), lambda i: (0, 0)),                  # b_out
        ],
        out_specs=pl.BlockSpec((block_batch, N, D), lambda i: (i, 0, 0)),
        compiler_params=pltpu.CompilerParams(
            dimension_semantics=("parallel",),
            vmem_limit_bytes=vmem_limit,
        ),
        cost_estimate=pl.CostEstimate(
            flops=flops,
            transcendentals=transcendentals,
            bytes_accessed=bytes_accessed,
        ),
    )(x, w_qkv, b_qkv, wo_b, bo_f)


def attention_reference(x, params, num_heads):
    """Pure-JAX f32 mirror of the PyTorch forward (for verification)."""
    B, N, D = x.shape
    head_dim = D // num_heads
    scale = float(head_dim) ** 0.5
    wq, bq, wk, bk, wv, bv, wo, bo = params

    q = x @ wq + bq
    k = x @ wk + bk
    v = x @ wv + bv

    def split_heads(t):
        return t.reshape(B, N, num_heads, head_dim).transpose(0, 2, 1, 3)

    q, k, v = split_heads(q), split_heads(k), split_heads(v)
    scores = jnp.einsum("bhqd,bhkd->bhqk", q, k) / scale
    coef = jax.nn.softmax(scores, axis=-1)
    attn = jnp.einsum("bhqk,bhkd->bhqd", coef, v)
    attn = attn.transpose(0, 2, 1, 3).reshape(B, N, D)
    return attn @ wo + bo


if __name__ == "__main__":
    B, N, D, H = 2, 8, 32, 4  # batch, num_patches, embedding dim, heads

    key = jax.random.PRNGKey(0)
    keys = jax.random.split(key, 9)

    def init_linear(kw, kb):
        # nn.Linear-shaped params, stored pre-transposed ([in, out]),
        # bias as (1, D) for TPU layout.
        w = jax.random.normal(kw, (D, D), dtype=jnp.float32) * 0.05
        b = jax.random.normal(kb, (1, D), dtype=jnp.float32) * 0.05
        return w, b

    wq, bq = init_linear(keys[0], keys[1])
    wk, bk = init_linear(keys[2], keys[3])
    wv, bv = init_linear(keys[4], keys[5])
    wo, bo = init_linear(keys[6], keys[7])
    params = (wq, bq, wk, bk, wv, bv, wo, bo)

    x = jax.random.normal(keys[8], (B, N, D), dtype=jnp.float32)

    out = attention_forward(x, params, num_heads=H, block_batch=1)
    out = jax.block_until_ready(out)

    ref = attention_reference(x, params, num_heads=H)
    assert out.shape == (B, N, D)
    # bf16 MXU operands + approx reciprocal -> relaxed tolerance vs f32 reference.
    assert jnp.allclose(out, ref, rtol=2e-2, atol=2e-2), "mismatch vs reference"

    print("KERNEL_OK")
</pallas_src>

<mosaic_0001>
module attributes {stable_mosaic.version = 11 : i64} {
  func.func @attention_kernel(%arg0: i32, %arg1: memref<1x8x32xf32, #tpu.memory_space<vmem>>, %arg2: memref<32x96xbf16, #tpu.memory_space<vmem>>, %arg3: memref<1x96xf32, #tpu.memory_space<vmem>>, %arg4: memref<32x32xbf16, #tpu.memory_space<vmem>>, %arg5: memref<1x32xf32, #tpu.memory_space<vmem>>, %arg6: memref<1x8x32xf32, #tpu.memory_space<vmem>>) attributes {dimension_semantics = [#tpu.dimension_semantics<parallel>], iteration_bounds = array<i64: 2>, scalar_prefetch = 0 : i64, scratch_operands = 0 : i64, tpu.core_type = #tpu.core_type<tc>, window_params = [{transform_indices = @transform_0, window_bounds = array<i64: 1, 8, 32>}, {pipeline_mode = #tpu.pipeline_mode<synchronous>, transform_indices = @transform_1, window_bounds = array<i64: 32, 96>}, {pipeline_mode = #tpu.pipeline_mode<synchronous>, transform_indices = @transform_2, window_bounds = array<i64: 1, 96>}, {pipeline_mode = #tpu.pipeline_mode<synchronous>, transform_indices = @transform_3, window_bounds = array<i64: 32, 32>}, {pipeline_mode = #tpu.pipeline_mode<synchronous>, transform_indices = @transform_4, window_bounds = array<i64: 1, 32>}, {transform_indices = @transform_5, window_bounds = array<i64: 1, 8, 32>}]} {
    %c0 = arith.constant 0 : index
    %c0_0 = arith.constant 0 : index
    %c0_1 = arith.constant 0 : index
    %0 = vector.load %arg1[%c0, %c0_0, %c0_1] : memref<1x8x32xf32, #tpu.memory_space<vmem>>, vector<1x8x32xf32>
    %1 = vector.shape_cast %0 : vector<1x8x32xf32> to vector<8x32xf32>
    %2 = arith.truncf %1 : vector<8x32xf32> to vector<8x32xbf16>
    %c0_2 = arith.constant 0 : index
    %c0_3 = arith.constant 0 : index
    %3 = vector.load %arg2[%c0_2, %c0_3] : memref<32x96xbf16, #tpu.memory_space<vmem>>, vector<32x96xbf16>
    %cst = arith.constant dense<0.000000e+00> : vector<8x96xf32>
    %4 = tpu.matmul %2, %3, %cst {dimension_numbers = #tpu.dot_dimension_numbers<[1], [0], [0], [1], [0, 0, 1, 1], [], []>} : vector<8x32xbf16>, vector<32x96xbf16>, vector<8x96xf32> -> vector<8x96xf32>
    %c0_4 = arith.constant 0 : index
    %c0_5 = arith.constant 0 : index
    %5 = vector.load %arg3[%c0_4, %c0_5] : memref<1x96xf32, #tpu.memory_space<vmem>>, vector<1x96xf32>
    %6 = vector.broadcast %5 : vector<1x96xf32> to vector<8x96xf32>
    %7 = arith.addf %4, %6 : vector<8x96xf32>
    %8 = vector.extract_strided_slice %7 {offsets = [0, 0], sizes = [8, 32], strides = [1, 1]} : vector<8x96xf32> to vector<8x32xf32>
    %9 = vector.extract_strided_slice %7 {offsets = [0, 32], sizes = [8, 32], strides = [1, 1]} : vector<8x96xf32> to vector<8x32xf32>
    %10 = vector.extract_strided_slice %7 {offsets = [0, 64], sizes = [8, 32], strides = [1, 1]} : vector<8x96xf32> to vector<8x32xf32>
    %cst_6 = arith.constant 0.000000e+00 : f32
    %11 = vector.broadcast %cst_6 : f32 to vector<8x32xf32>
    %12 = vector.extract_strided_slice %8 {offsets = [0, 0], sizes = [8, 8], strides = [1, 1]} : vector<8x32xf32> to vector<8x8xf32>
    %13 = arith.truncf %12 : vector<8x8xf32> to vector<8x8xbf16>
    %14 = vector.extract_strided_slice %9 {offsets = [0, 0], sizes = [8, 8], strides = [1, 1]} : vector<8x32xf32> to vector<8x8xf32>
    %15 = arith.truncf %14 : vector<8x8xf32> to vector<8x8xbf16>
    %16 = vector.extract_strided_slice %10 {offsets = [0, 0], sizes = [8, 8], strides = [1, 1]} : vector<8x32xf32> to vector<8x8xf32>
    %17 = arith.truncf %16 : vector<8x8xf32> to vector<8x8xbf16>
    %cst_7 = arith.constant dense<0.000000e+00> : vector<8x8xf32>
    %18 = tpu.matmul %13, %15, %cst_7 {dimension_numbers = #tpu.dot_dimension_numbers<[1], [1], [0], [0], [0, 0, 1, 0], [], []>} : vector<8x8xbf16>, vector<8x8xbf16>, vector<8x8xf32> -> vector<8x8xf32>
    %cst_8 = arith.constant dense<0xFF800000> : vector<8xf32>
    %19 = vector.multi_reduction <maximumf>, %18, %cst_8 [1] : vector<8x8xf32> to vector<8xf32>
    %20 = vector.shape_cast %19 : vector<8xf32> to vector<8x1xf32>
    %21 = vector.broadcast %20 : vector<8x1xf32> to vector<8x8xf32>
    %22 = arith.subf %18, %21 : vector<8x8xf32>
    %23 = math.exp %22 : vector<8x8xf32>
    %cst_9 = arith.constant dense<0.000000e+00> : vector<8xf32>
    %24 = vector.multi_reduction <add>, %23, %cst_9 [1] : vector<8x8xf32> to vector<8xf32>
    %25 = vector.shape_cast %24 : vector<8xf32> to vector<8x1xf32>
    %26 = tpu.reciprocal %25 {approx = true} : vector<8x1xf32> -> vector<8x1xf32>
    %27 = vector.broadcast %26 : vector<8x1xf32> to vector<8x8xf32>
    %28 = arith.mulf %23, %27 : vector<8x8xf32>
    %29 = arith.truncf %28 : vector<8x8xf32> to vector<8x8xbf16>
    %cst_10 = arith.constant dense<0.000000e+00> : vector<8x8xf32>
    %30 = tpu.matmul %29, %17, %cst_10 {dimension_numbers = #tpu.dot_dimension_numbers<[1], [0], [0], [1], [0, 0, 1, 1], [], []>} : vector<8x8xbf16>, vector<8x8xbf16>, vector<8x8xf32> -> vector<8x8xf32>
    %31 = arith.truncf %30 : vector<8x8xf32> to vector<8x8xbf16>
    %c0_11 = arith.constant 0 : index
    %c0_12 = arith.constant 0 : index
    %32 = vector.load %arg4[%c0_11, %c0_12] : memref<32x32xbf16, #tpu.memory_space<vmem>>, vector<8x32xbf16>
    %cst_13 = arith.constant dense<0.000000e+00> : vector<8x32xf32>
    %33 = tpu.matmul %31, %32, %cst_13 {dimension_numbers = #tpu.dot_dimension_numbers<[1], [0], [0], [1], [0, 0, 1, 1], [], []>} : vector<8x8xbf16>, vector<8x32xbf16>, vector<8x32xf32> -> vector<8x32xf32>
    %34 = arith.addf %11, %33 : vector<8x32xf32>
    %35 = vector.extract_strided_slice %8 {offsets = [0, 8], sizes = [8, 8], strides = [1, 1]} : vector<8x32xf32> to vector<8x8xf32>
    %36 = arith.truncf %35 : vector<8x8xf32> to vector<8x8xbf16>
    %37 = vector.extract_strided_slice %9 {offsets = [0, 8], sizes = [8, 8], strides = [1, 1]} : vector<8x32xf32> to vector<8x8xf32>
    %38 = arith.truncf %37 : vector<8x8xf32> to vector<8x8xbf16>
    %39 = vector.extract_strided_slice %10 {offsets = [0, 8], sizes = [8, 8], strides = [1, 1]} : vector<8x32xf32> to vector<8x8xf32>
    %40 = arith.truncf %39 : vector<8x8xf32> to vector<8x8xbf16>
    %cst_14 = arith.constant dense<0.000000e+00> : vector<8x8xf32>
    %41 = tpu.matmul %36, %38, %cst_14 {dimension_numbers = #tpu.dot_dimension_numbers<[1], [1], [0], [0], [0, 0, 1, 0], [], []>} : vector<8x8xbf16>, vector<8x8xbf16>, vector<8x8xf32> -> vector<8x8xf32>
    %cst_15 = arith.constant dense<0xFF800000> : vector<8xf32>
    %42 = vector.multi_reduction <maximumf>, %41, %cst_15 [1] : vector<8x8xf32> to vector<8xf32>
    %43 = vector.shape_cast %42 : vector<8xf32> to vector<8x1xf32>
    %44 = vector.broadcast %43 : vector<8x1xf32> to vector<8x8xf32>
    %45 = arith.subf %41, %44 : vector<8x8xf32>
    %46 = math.exp %45 : vector<8x8xf32>
    %cst_16 = arith.constant dense<0.000000e+00> : vector<8xf32>
    %47 = vector.multi_reduction <add>, %46, %cst_16 [1] : vector<8x8xf32> to vector<8xf32>
    %48 = vector.shape_cast %47 : vector<8xf32> to vector<8x1xf32>
    %49 = tpu.reciprocal %48 {approx = true} : vector<8x1xf32> -> vector<8x1xf32>
    %50 = vector.broadcast %49 : vector<8x1xf32> to vector<8x8xf32>
    %51 = arith.mulf %46, %50 : vector<8x8xf32>
    %52 = arith.truncf %51 : vector<8x8xf32> to vector<8x8xbf16>
    %cst_17 = arith.constant dense<0.000000e+00> : vector<8x8xf32>
    %53 = tpu.matmul %52, %40, %cst_17 {dimension_numbers = #tpu.dot_dimension_numbers<[1], [0], [0], [1], [0, 0, 1, 1], [], []>} : vector<8x8xbf16>, vector<8x8xbf16>, vector<8x8xf32> -> vector<8x8xf32>
    %54 = arith.truncf %53 : vector<8x8xf32> to vector<8x8xbf16>
    %c8 = arith.constant 8 : index
    %c0_18 = arith.constant 0 : index
    %55 = vector.load %arg4[%c8, %c0_18] : memref<32x32xbf16, #tpu.memory_space<vmem>>, vector<8x32xbf16>
    %cst_19 = arith.constant dense<0.000000e+00> : vector<8x32xf32>
    %56 = tpu.matmul %54, %55, %cst_19 {dimension_numbers = #tpu.dot_dimension_numbers<[1], [0], [0], [1], [0, 0, 1, 1], [], []>} : vector<8x8xbf16>, vector<8x32xbf16>, vector<8x32xf32> -> vector<8x32xf32>
    %57 = arith.addf %34, %56 : vector<8x32xf32>
    %58 = vector.extract_strided_slice %8 {offsets = [0, 16], sizes = [8, 8], strides = [1, 1]} : vector<8x32xf32> to vector<8x8xf32>
    %59 = arith.truncf %58 : vector<8x8xf32> to vector<8x8xbf16>
    %60 = vector.extract_strided_slice %9 {offsets = [0, 16], sizes = [8, 8], strides = [1, 1]} : vector<8x32xf32> to vector<8x8xf32>
    %61 = arith.truncf %60 : vector<8x8xf32> to vector<8x8xbf16>
    %62 = vector.extract_strided_slice %10 {offsets = [0, 16], sizes = [8, 8], strides = [1, 1]} : vector<8x32xf32> to vector<8x8xf32>
    %63 = arith.truncf %62 : vector<8x8xf32> to vector<8x8xbf16>
    %cst_20 = arith.constant dense<0.000000e+00> : vector<8x8xf32>
    %64 = tpu.matmul %59, %61, %cst_20 {dimension_numbers = #tpu.dot_dimension_numbers<[1], [1], [0], [0], [0, 0, 1, 0], [], []>} : vector<8x8xbf16>, vector<8x8xbf16>, vector<8x8xf32> -> vector<8x8xf32>
    %cst_21 = arith.constant dense<0xFF800000> : vector<8xf32>
    %65 = vector.multi_reduction <maximumf>, %64, %cst_21 [1] : vector<8x8xf32> to vector<8xf32>
    %66 = vector.shape_cast %65 : vector<8xf32> to vector<8x1xf32>
    %67 = vector.broadcast %66 : vector<8x1xf32> to vector<8x8xf32>
    %68 = arith.subf %64, %67 : vector<8x8xf32>
    %69 = math.exp %68 : vector<8x8xf32>
    %cst_22 = arith.constant dense<0.000000e+00> : vector<8xf32>
    %70 = vector.multi_reduction <add>, %69, %cst_22 [1] : vector<8x8xf32> to vector<8xf32>
    %71 = vector.shape_cast %70 : vector<8xf32> to vector<8x1xf32>
    %72 = tpu.reciprocal %71 {approx = true} : vector<8x1xf32> -> vector<8x1xf32>
    %73 = vector.broadcast %72 : vector<8x1xf32> to vector<8x8xf32>
    %74 = arith.mulf %69, %73 : vector<8x8xf32>
    %75 = arith.truncf %74 : vector<8x8xf32> to vector<8x8xbf16>
    %cst_23 = arith.constant dense<0.000000e+00> : vector<8x8xf32>
    %76 = tpu.matmul %75, %63, %cst_23 {dimension_numbers = #tpu.dot_dimension_numbers<[1], [0], [0], [1], [0, 0, 1, 1], [], []>} : vector<8x8xbf16>, vector<8x8xbf16>, vector<8x8xf32> -> vector<8x8xf32>
    %77 = arith.truncf %76 : vector<8x8xf32> to vector<8x8xbf16>
    %c16 = arith.constant 16 : index
    %c0_24 = arith.constant 0 : index
    %78 = vector.load %arg4[%c16, %c0_24] : memref<32x32xbf16, #tpu.memory_space<vmem>>, vector<8x32xbf16>
    %cst_25 = arith.constant dense<0.000000e+00> : vector<8x32xf32>
    %79 = tpu.matmul %77, %78, %cst_25 {dimension_numbers = #tpu.dot_dimension_numbers<[1], [0], [0], [1], [0, 0, 1, 1], [], []>} : vector<8x8xbf16>, vector<8x32xbf16>, vector<8x32xf32> -> vector<8x32xf32>
    %80 = arith.addf %57, %79 : vector<8x32xf32>
    %81 = vector.extract_strided_slice %8 {offsets = [0, 24], sizes = [8, 8], strides = [1, 1]} : vector<8x32xf32> to vector<8x8xf32>
    %82 = arith.truncf %81 : vector<8x8xf32> to vector<8x8xbf16>
    %83 = vector.extract_strided_slice %9 {offsets = [0, 24], sizes = [8, 8], strides = [1, 1]} : vector<8x32xf32> to vector<8x8xf32>
    %84 = arith.truncf %83 : vector<8x8xf32> to vector<8x8xbf16>
    %85 = vector.extract_strided_slice %10 {offsets = [0, 24], sizes = [8, 8], strides = [1, 1]} : vector<8x32xf32> to vector<8x8xf32>
    %86 = arith.truncf %85 : vector<8x8xf32> to vector<8x8xbf16>
    %cst_26 = arith.constant dense<0.000000e+00> : vector<8x8xf32>
    %87 = tpu.matmul %82, %84, %cst_26 {dimension_numbers = #tpu.dot_dimension_numbers<[1], [1], [0], [0], [0, 0, 1, 0], [], []>} : vector<8x8xbf16>, vector<8x8xbf16>, vector<8x8xf32> -> vector<8x8xf32>
    %cst_27 = arith.constant dense<0xFF800000> : vector<8xf32>
    %88 = vector.multi_reduction <maximumf>, %87, %cst_27 [1] : vector<8x8xf32> to vector<8xf32>
    %89 = vector.shape_cast %88 : vector<8xf32> to vector<8x1xf32>
    %90 = vector.broadcast %89 : vector<8x1xf32> to vector<8x8xf32>
    %91 = arith.subf %87, %90 : vector<8x8xf32>
    %92 = math.exp %91 : vector<8x8xf32>
    %cst_28 = arith.constant dense<0.000000e+00> : vector<8xf32>
    %93 = vector.multi_reduction <add>, %92, %cst_28 [1] : vector<8x8xf32> to vector<8xf32>
    %94 = vector.shape_cast %93 : vector<8xf32> to vector<8x1xf32>
    %95 = tpu.reciprocal %94 {approx = true} : vector<8x1xf32> -> vector<8x1xf32>
    %96 = vector.broadcast %95 : vector<8x1xf32> to vector<8x8xf32>
    %97 = arith.mulf %92, %96 : vector<8x8xf32>
    %98 = arith.truncf %97 : vector<8x8xf32> to vector<8x8xbf16>
    %cst_29 = arith.constant dense<0.000000e+00> : vector<8x8xf32>
    %99 = tpu.matmul %98, %86, %cst_29 {dimension_numbers = #tpu.dot_dimension_numbers<[1], [0], [0], [1], [0, 0, 1, 1], [], []>} : vector<8x8xbf16>, vector<8x8xbf16>, vector<8x8xf32> -> vector<8x8xf32>
    %100 = arith.truncf %99 : vector<8x8xf32> to vector<8x8xbf16>
    %c24 = arith.constant 24 : index
    %c0_30 = arith.constant 0 : index
    %101 = vector.load %arg4[%c24, %c0_30] : memref<32x32xbf16, #tpu.memory_space<vmem>>, vector<8x32xbf16>
    %cst_31 = arith.constant dense<0.000000e+00> : vector<8x32xf32>
    %102 = tpu.matmul %100, %101, %cst_31 {dimension_numbers = #tpu.dot_dimension_numbers<[1], [0], [0], [1], [0, 0, 1, 1], [], []>} : vector<8x8xbf16>, vector<8x32xbf16>, vector<8x32xf32> -> vector<8x32xf32>
    %103 = arith.addf %80, %102 : vector<8x32xf32>
    %c0_32 = arith.constant 0 : index
    %c0_33 = arith.constant 0 : index
    %104 = vector.load %arg5[%c0_32, %c0_33] : memref<1x32xf32, #tpu.memory_space<vmem>>, vector<1x32xf32>
    %105 = vector.broadcast %104 : vector<1x32xf32> to vector<8x32xf32>
    %106 = arith.addf %103, %105 : vector<8x32xf32>
    %c0_34 = arith.constant 0 : index
    %c0_35 = arith.constant 0 : index
    %c0_36 = arith.constant 0 : index
    %107 = vector.load %arg6[%c0_34, %c0_35, %c0_36] : memref<1x8x32xf32, #tpu.memory_space<vmem>>, vector<1x8x32xf32>
    %108 = vector.shape_cast %107 : vector<1x8x32xf32> to vector<8x32xf32>
    %109 = vector.shape_cast %106 : vector<8x32xf32> to vector<1x8x32xf32>
    tpu.vector_store %arg6[%c0_34, %c0_35, %c0_36], %109 {strides = array<i32>} : memref<1x8x32xf32, #tpu.memory_space<vmem>>, vector<1x8x32xf32>,
    return
  }
  func.func @transform_0(%arg0: i32) -> (i32, i32, i32) {
    %c0_i32 = arith.constant 0 : i32
    %c0_i32_0 = arith.constant 0 : i32
    %c0_i32_1 = arith.constant 0 : i32
    return %arg0, %c0_i32, %c0_i32_0 : i32, i32, i32
  }
  func.func @transform_1(%arg0: i32) -> (i32, i32) {
    %c0_i32 = arith.constant 0 : i32
    %c0_i32_0 = arith.constant 0 : i32
    %c0_i32_1 = arith.constant 0 : i32
    return %c0_i32, %c0_i32_0 : i32, i32
  }
  func.func @transform_2(%arg0: i32) -> (i32, i32) {
    %c0_i32 = arith.constant 0 : i32
    %c0_i32_0 = arith.constant 0 : i32
    %c0_i32_1 = arith.constant 0 : i32
    return %c0_i32, %c0_i32_0 : i32, i32
  }
  func.func @transform_3(%arg0: i32) -> (i32, i32) {
    %c0_i32 = arith.constant 0 : i32
    %c0_i32_0 = arith.constant 0 : i32
    %c0_i32_1 = arith.constant 0 : i32
    return %c0_i32, %c0_i32_0 : i32, i32
  }
  func.func @transform_4(%arg0: i32) -> (i32, i32) {
    %c0_i32 = arith.constant 0 : i32
    %c0_i32_0 = arith.constant 0 : i32
    %c0_i32_1 = arith.constant 0 : i32
    return %c0_i32, %c0_i32_0 : i32, i32
  }
  func.func @transform_5(%arg0: i32) -> (i32, i32, i32) {
    %c0_i32 = arith.constant 0 : i32
    %c0_i32_0 = arith.constant 0 : i32
    %c0_i32_1 = arith.constant 0 : i32
    return %arg0, %c0_i32, %c0_i32_0 : i32, i32, i32
  }
}

</mosaic_0001>

<bundles_post_ra>
// kernel: tpu_custom_call.1
= control target key start
LH: loop header
LB: loop body
LE: loop exit
PB: predicated region body
PF: predicated region fallthrough
CT: control target
= control target key end

     0   :  { %10 = vsyncpa [#allocation3], 0  ;;  %s1864_s0 = inlined_call_operand.hbm [shape: f32[2,8,32], index: 0, kind: input, shape index: {}]   ;;  %s1865_s1 = inlined_call_operand.hbm [shape: bf16[32,96], index: 1, kind: input, shape index: {}]   ;;  %s1866_s2 = inlined_call_operand.vmem [shape: f32[1,96], index: 2, kind: input, shape index: {}]   ;;  %s1867_s3 = inlined_call_operand.hbm [shape: bf16[32,32], index: 3, kind: input, shape index: {}]   ;;  %s1868_s4 = inlined_call_operand.vmem [shape: f32[1,32], index: 4, kind: input, shape index: {}]   ;;  %s1869_s5 = inlined_call_operand.hbm [shape: f32[2,8,32], index: 5, kind: output, shape index: {}]  }
   0x1   :  { %12 = vsyncpa [#allocation3 + $0x1], 0 }
   0x2   :  { %13 = vsyncpa [#allocation6], 0 }
   0x3   :  { %14 = vsyncpa [#allocation4], 0 }
   0x4   :  { %16 = vsyncpa [#allocation4 + $0x1], 0  ;;  %s1534_s18 = smov 0   ;;  %s1536_s19 = smov 0  }
   0x5   :  { %s1538_s20 = smov 0   ;;  %s1540_s21 = smov 0  }
   0x6 LB: > { %s1555_s22 = sadd.s32 4294967295, %s1483_s21   ;;  %s1087_s23 = sadd.s32 4294967294, %s1483_s21   ;;  %s1483_s21 = sphi %s1540_s21, %s1889_s21   ;;  %s1479_s20 = sphi %s1538_s20, %s1888_s20   ;;  %s1475_s19 = sphi %s1536_s19, %s1887_s19   ;;  %s1471_s18 = sphi %s1534_s18, %s1886_s18  }
   0x7   : > { %p42_p0 = scmp.ne.s32.totalorder %s1475_s19, %s1471_s18  ;;  %p1870_p1 = scmp.eq.s32.totalorder %s1555_s22, 0 }
   0x8   : > { %p156_p3 = scmp.eq.s32.totalorder %s1087_s23, 1  ;;  %p1088_p5 = scmp.ge.s32.totalorder %s1483_s21, 1 }
   0x9   : > { %p1564_p4 = por %p1870_p1, %p42_p0  ;;  %p163_p7 = scmp.lt.s32.totalorder %s1483_s21, 3 }
   0xa   : > { %p1569_p6 = por %p156_p3, %p42_p0  ;;  %s1485_s27 = smov [#allocation5]  }
   0xb   : > { %s1873_s24 = scalar_select %p1564_p4, 1, 0 }
   0xc   : > { %s1874_s25 = scalar_select %p1569_p6, 1, 0 }
   0xd   : > { %p1574_p8 = pnand %p1088_p5, %p163_p7  ;;  %s175_s28 = sshll.u32 %s1485_s27, 4  ;;  %s1578_s28 = int_to_ptr.vmem [resolvable:$true] %s175_s28 }
   0xe   : > { %s1486_s30 = smov [#allocation7]   ;;  %s1327_s9 = scalar_lea.hbm %s1865_s1, 256 }
   0xf   : > { %p1239_p9 = pneg %p1574_p8  ;;  %s191_s6 = sshll.u32 %s1486_s30, 4  ;;  %s1589_s6 = int_to_ptr.vmem [resolvable:$true] %s191_s6 }
  0x10   : > { %p1328_p12 = scmp.ne.s32.totalorder %s1865_s1, %s1327_s9  ;;  %p1334_p5 = scmp.lt.u32.totalorder %s1327_s9, %s1865_s1 }
  0x11   : > { %p1585_p11 = pnand %p1239_p9, %p1870_p1 }
  0x13   : > { %p1329_p13 = pneg %p1585_p11 }
  0x15   : > { %p1330_p0 = pnand %p1329_p13, %p1328_p12 }
  0x17   : > { %p1331_p3 = pneg %p1330_p0 }
  0x19   : > { %p1336_p7 = pnand %p1334_p5, %p1331_p3 }
  0x1b   : > { %1339 = shalt.err (!%p1336_p7)
}
  0x1c   : > { %s1340_s14 = scalar_lea.vmem %s1578_s28, 256  ;;  %p1348_p2 = scmp.lt.s32.totalorder %s1578_s28, %s1578_s28 }
  0x1d   : > { %p1341_p9 = scmp.ne.s32.totalorder %s1578_s28, %s1340_s14  ;;  %p1349_p12 = scmp.lt.s32.totalorder %s1340_s14, %s1340_s14 }
  0x1f   : > { %p1343_p10 = pnand %p1341_p9, %p1329_p13  ;;  %p1350_p0 = por %p1349_p12, %p1348_p2 }
  0x21   : > { %p1344_p1 = pneg %p1343_p10 }
  0x23   : > { %p1351_p6 = pnand %p1350_p0, %p1344_p1 }
  0x25   : > { %1354 = shalt.err (!%p1351_p6)
}
  0x26   : > { %s1487_s15 = smov 64   ;;  %s1488_s16 = smov 4  }
  0x27   : > { %1242 = dma.hbm_to_vmem [thread:$0]  (!%p1585_p11), %s1865_s1, 256, %s1578_s28, [#allocation6], %s1487_s15, %s1487_s15, %s1488_s16  }
  0x28   : > { %s1355_s7 = scalar_lea.hbm %s1867_s3, 256 }
  0x29   : > { %p1356_p2 = scmp.ne.s32.totalorder %s1867_s3, %s1355_s7  ;;  %p1362_p10 = scmp.lt.u32.totalorder %s1355_s7, %s1867_s3 }
  0x2b   : > { %p1358_p1 = pnand %p1356_p2, %p1329_p13 }
  0x2d   : > { %p1359_p6 = pneg %p1358_p1 }
  0x2f   : > { %p1364_p3 = pnand %p1362_p10, %p1359_p6 }
  0x31   : > { %1367 = shalt.err (!%p1364_p3)
}
  0x32   : > { %s1368_s28 = scalar_lea.vmem %s1589_s6, 256  ;;  %p1376_p12 = scmp.lt.s32.totalorder %s1589_s6, %s1589_s6 }
  0x33   : > { %p1369_p5 = scmp.ne.s32.totalorder %s1589_s6, %s1368_s28  ;;  %p1377_p0 = scmp.lt.s32.totalorder %s1368_s28, %s1368_s28 }
  0x35   : > { %p1371_p7 = pnand %p1369_p5, %p1329_p13  ;;  %p1378_p2 = por %p1377_p0, %p1376_p12 }
  0x37   : > { %p1372_p9 = pneg %p1371_p7 }
  0x39   : > { %p1379_p1 = pnand %p1378_p2, %p1372_p9 }
  0x3b   : > { %1382 = shalt.err (!%p1379_p1)
}
  0x3c   : > { %1245 = dma.hbm_to_vmem [thread:$0]  (!%p1585_p11), %s1867_s3, 256, %s1589_s6, [#allocation6], %s1487_s15, %s1487_s15, %s1488_s16  }
  0x3d   : > { %s1644_s14 = sadd.s32 1, %s1483_s21   ;;  %s29_s29 = sadd.s32 1, %s1479_s20 }
  0x3e   : > { %s26_s17 = ssub.s32 %s1483_s21, %s1644_s14  ;;  %p36_p13 = scmp.ne.s32.totalorder %s1479_s20, %s1475_s19 }
  0x3f   : > { %p27_p6 = scmp.eq.s32.totalorder %s26_s17, 0  ;;  %p37_p10 = scmp.eq.s32.totalorder %s1483_s21, 0 }
  0x40   : > { %p1877_p3 = scmp.eq.s32.totalorder %s1555_s22, 1  ;;  %p1256_p7 = scmp.lt.s32.totalorder %s1483_s21, 2 }
  0x41   : > { %s1660_s27 = scalar_select %p27_p6, %s1479_s20, %s29_s29  }
  0x42   : > { %p1654_p5 = por %p1877_p3, %p36_p13  ;;  %p38_p9 = por %p37_p10, %p36_p13 }
  0x43   : > { %s208_s30 = sand.u32 1, %s1479_s20   ;;  %s1093_s6 = sshll.u32 %s1483_s21, 7 }
  0x44   : > { %s1878_s23 = scalar_select %p1654_p5, 1, 0 }
  0x45   : > { %s1092_s7 = sshll.u32 %s208_s30, 3  ;;  %s1667_s8 = scalar_lea.hbm %s1864_s0, %s1093_s6 }
  0x46   : > { %s212_s9 = scalar_lea.vmem [#allocation2], %s1092_s7  ;;  %p1671_p11 = pnand %p1256_p7, %p38_p9 }
  0x47   : > { %s219_s10 = sshll.u32 %s212_s9, 4  ;;  %s209_s28 = scalar_lea.sflag [#allocation3], %s208_s30  ;;  %s1669_s10 = int_to_ptr.vmem [resolvable:$true] %s219_s10 }
  0x48   : > { %s1383_s12 = scalar_lea.hbm %s1667_s8, 128  ;;  %p1385_p0 = pneg %p1671_p11 }
  0x49   : > { %p1384_p12 = scmp.ne.s32.totalorder %s1667_s8, %s1383_s12  ;;  %s1388_s17 = scalar_lea.hbm %s1864_s0, 256 }
  0x4a   : > { %p1389_p13 = scmp.lt.u32.totalorder %s1667_s8, %s1864_s0  ;;  %p1390_p6 = scmp.lt.u32.totalorder %s1388_s17, %s1383_s12 }
  0x4b   : > { %p1386_p2 = pnand %p1385_p0, %p1384_p12  ;;  %p1392_p3 = scmp.lt.u32.totalorder %s1383_s12, %s1667_s8 }
  0x4c   : > { %p1391_p10 = por %p1390_p6, %p1389_p13 }
  0x4d   : > { %p1387_p1 = pneg %p1386_p2 }
  0x4e   : > { %p1393_p7 = por %p1392_p3, %p1391_p10 }
  0x50   : > { %p1394_p9 = pnand %p1393_p7, %p1387_p1 }
  0x52   : > { %1397 = shalt.err (!%p1394_p9)
}
  0x53   : > { %s1398_s30 = scalar_lea.vmem %s1669_s10, 128  ;;  %s1489_s15 = smov [#allocation2]  }
  0x54   : > { %p1399_p12 = scmp.ne.s32.totalorder %s1669_s10, %s1398_s30  ;;  %s1403_s16 = sshll.u32 %s1489_s15, 4  ;;  %s1404_s16 = int_to_ptr.vmem [resolvable:$false] %s1403_s16 }
  0x55   : > { %s1405_s9 = scalar_lea.vmem %s1404_s16, 256  ;;  %p1406_p4 = scmp.lt.s32.totalorder %s1669_s10, %s1404_s16 }
  0x56   : > { %p1401_p2 = pnand %p1399_p12, %p1385_p0  ;;  %p1407_p13 = scmp.lt.s32.totalorder %s1405_s9, %s1398_s30 }
  0x58   : > { %p1402_p5 = pneg %p1401_p2  ;;  %p1408_p6 = por %p1407_p13, %p1406_p4 }
  0x5a   : > { %p1409_p10 = pnand %p1408_p6, %p1402_p5 }
  0x5c   : > { %1412 = shalt.err (!%p1409_p10)
}
  0x5d   : > { %1249 = dma.hbm_to_vmem [thread:$0]  (!%p1671_p11), %s1667_s8, 128, %s1669_s10, %s209_s28  }
  0x5e   : > { %228 = sbr.rel (%p1574_p8) target bundleno = 2720 (0xaa0), region = 40  ;;  %s1703_s12 = sand.u32 (!%p1574_p8), 1, %s1475_s19  }
  0x5f   : > { %s1095_s13 = sshll.u32 (!%p1574_p8), %s1703_s12, 3  ;;  %s231_s29 = scalar_lea.sflag (!%p1574_p8), [#allocation3], %s1703_s12 }
  0x60   : > { %s234_s17 = scalar_lea.vmem (!%p1574_p8), [#allocation2], %s1095_s13  ;;  %p1880_p4 = scmp.ne.s32.totalorder (!%p1574_p8), %s1873_s24, 0 }
  0x65   : > { %1458 = dma.done.wait (%p1880_p4), %s231_s29, 128  }
  0x66   : > { %1460 = vsyncadd (%p1880_p4), %s231_s29, 4294967168  ;;  %p1881_p5 = scmp.eq.s32.totalorder %s1555_s22, 0 }
  0x68   : > { %1462 = dma.done.wait (%p1881_p5), [#allocation6], 512   ;;  %p1882_p8 = pmov %p1881_p5 }
  0x69   : > { %v1490_v0 = vmov 0.0   ;;  %vm1491_vm0 = vmmov 0   ;;  %v1309_v1 = vld [vmem:[#allocation5] sm:$0xff]   ;;  %v1310_v2 = vld [vmem:[#allocation5 + $0x8] sm:$0xff]   ;;  %v270_v3 = vld [vmem:[%s234_s17] sm:$0xff]  ;;  %vm295_vm1 = vcmask 261120  }
  0x6a   : > { %1464 = vsyncadd (%p1882_p8), [#allocation6], 4294966784  ;;  %1147 = vmatprep.subr.bf16.mxu0 %v1490_v0  ;;  %1151 = vmatprep.mubr.msk.bf16.mxu0 %vm1491_vm0, %v1490_v0  ;;  %v271_v4 = vpack.c.bf16 %v270_v3, %v270_v3  ;;  %v1099_v5 = vld [vmem:[%s1866_s2] ss:$0 sm:$0xff]  ;;  %s1492_s8 = smov 120   ;;  %s1493_s10 = smov 96  }
  0x6b   : > { %1155 = vmatprep.subr.bf16.mxu1 %v1490_v0  ;;  %1157 = vmatprep.mubr.msk.bf16.mxu1 %vm1491_vm0, %v1490_v0  ;;  %s1494_s11 = smov 88   ;;  %vm343_vm2 = vcmask 64512   ;;  %s1495_s28 = smov 64   ;;  %vm407_vm3 = vcmask 1043456   ;;  %v452_v49 = vld [vmem:[#allocation7] sm:$0xf] }
  0x6c   : > { %1148 = vmatpush3.bf16.msra.mxu0 %v1309_v1  ;;  %s1496_s7 = smov 56   ;;  %s1497_s6 = smov 112   ;;  %v615_v50 = vsel %vm407_vm3, %v452_v49, 0  ;;  %v564_v51 = vld [vmem:[#allocation7 + $0x4] sm:$0xf] }
  0x6d   : > { %1149 = vmatprep.subr.bf16.mxu0 %v1490_v0  ;;  %s1498_s30 = smov 80   ;;  %v569_v52 = vsel %vm407_vm3, %v564_v51, 0  ;;  %s1499_s15 = smov 72  }
  0x6e   : > { %s1500_s16 = smov 104   ;;  %s1501_s9 = smov 48  }
  0x6f   : > { %s1502_s29 = smov 40   ;;  %s1117_s26 = sshll.u32 %s1555_s22, 7 }
  0x70   : > { %1150 = vmatpush3.bf16.msra.mxu0 %v1310_v2  ;;  %s985_s22 = scalar_lea.sflag [#allocation4], %s1703_s12  ;;  %p1883_p0 = scmp.ne.s32.totalorder %s1878_s23, 0 }
  0x71   : > { %1161 = vmatprep.subr.bf16.mxu0 %v1490_v0 }
  0x73   : > { %1152 = vmatmul.mubr.msk.bf16.vlgmr.msra.gmra.mrb[0].mxu0 %vm295_vm1, %v271_v4 }
  0x74   : > { %1163 = vmatprep.mubr.msk.bf16.mxu0 %vm1491_vm0, %v1490_v0 }
 0x146   : > { %v333_v6 = vpop.f32.mrb[0].mxu0 }
 0x147   : > { %v334_v7 = vadd.f32 %v1099_v5, %v333_v6  ;;  %v1153_v8 = vpop.f32.mrb[1].mxu0 }
 0x148   : > { %v336_v9 = vpop.f32.mrb[2].mxu0 }
 0x149   : > { %v1731_v10 = vpack.c.bf16 %v334_v7, %v334_v7  ;;  %v1154_v11 = vpop.f32.mrb[3].mxu0 }
 0x14b   : > { %453 = vrot.lane.b32.xlu1 %v1731_v10, %s1492_s8  ;;  %341 = vrot.lane.b32.xlu0 %v1731_v10, %s1493_s10  ;;  %s268_s8 = scalar_lea.vmem [#allocation8], %s1095_s13 }
 0x14c   : > { %s998_s10 = sshll.u32 %s268_s8, 4  ;;  %s1821_s10 = int_to_ptr.vmem [resolvable:$true] %s998_s10 }
 0x14d   : > { %s1413_s13 = scalar_lea.vmem %s1821_s10, 128 }
 0x14e   : > { %p1414_p11 = scmp.ne.s32.totalorder %s1821_s10, %s1413_s13 }
 0x14f   : > { %455 = vrot.lane.b32.xlu0 %v1731_v10, %s1494_s11 }
 0x150   : > { %p1415_p1 = pnand %p1414_p11, %p1883_p0 }
 0x152   : > { %p1416_p3 = pneg %p1415_p1 }
 0x1bd   : > { %v342_v12 = vpop.permute.xlu0 %341  ;;  %v454_v16 = vpop.permute.xlu1 %453 }
 0x1be   : > { %v348_v13 = vsel %vm343_vm2, %v342_v12, 0 }
 0x1bf   : > { %1156 = vmatpush3.bf16.xpose.msra.mxu1 %v348_v13 }
 0x1c0   : > { %1167 = vmatprep.subr.bf16.mxu1 %v1490_v0 }
 0x1c1   : > { %v456_v14 = vpop.permute.xlu0 %455 }
 0x1c2   : > { %v461_v15 = vsel %vm343_vm2, %v456_v14, 0 }
 0x1c6   : > { %1158 = vmatmul.mubr.msk.bf16.vlgmr.msra.gmra.mrb[0].mxu1 %vm343_vm2, %v1731_v10 }
 0x1c7   : > { %1168 = vmatpush3.bf16.xpose.msra.mxu1 %v461_v15  ;;  %1169 = vmatprep.mubr.msk.bf16.mxu1 %vm1491_vm0, %v1490_v0 }
 0x1c8   : > { %1179 = vmatprep.subr.bf16.mxu1 %v1490_v0 }
 0x1ce   : > { %1170 = vmatmul.mubr.msk.bf16.vlgmr.msra.gmra.mrb[4].mxu1 %vm343_vm2, %v454_v16 }
 0x1cf   : > { %1181 = vmatprep.mubr.msk.bf16.mxu1 %vm1491_vm0, %v1490_v0  ;;  %1180 = vmatpush3.bf16.msra.mxu1 %v569_v52 }
 0x1d0   : > { %1191 = vmatprep.subr.bf16.mxu1 %v1490_v0 }
 0x299   : > { %v384_v17 = vpop.f32.mrb[0].mxu1 }
 0x29a   : > { %v1159_v18 = vpop.f32.mrb[1].mxu1  ;;  %v390_v19 = vsel %vm343_vm2, %v384_v17, -inf }
 0x29b   : > { %391 = vmax.xlane.f32.xlu1 %v390_v19  ;;  %v387_v20 = vpop.f32.mrb[2].mxu1 }
 0x29c   : > { %v1160_v21 = vpop.f32.mrb[3].mxu1 }
 0x2a1   : > { %v497_v22 = vpop.f32.mrb[4].mxu1 }
 0x2a2   : > { %v1171_v23 = vpop.f32.mrb[5].mxu1  ;;  %v503_v24 = vsel %vm343_vm2, %v497_v22, -inf }
 0x2a3   : > { %504 = vmax.xlane.f32.xlu0 %v503_v24  ;;  %v500_v25 = vpop.f32.mrb[6].mxu1 }
 0x2a4   : > { %v1172_v26 = vpop.f32.mrb[7].mxu1 }
 0x328   : > { %v392_v27 = vpop.xlane.xlu1 %391 }
 0x329   : > { %v393_v28 = vsub.f32 %v384_v17, %v392_v27 }
 0x32b   : > { %v394_v29 = vmul.f32 1.442695, %v393_v28 }
 0x32d   : > { %1311 = vpow2.f32 %v394_v29 }
 0x330   : > { %v505_v30 = vpop.xlane.xlu0 %504 }
 0x331   : > { %v506_v31 = vsub.f32 %v497_v22, %v505_v30 }
 0x333   : > { %v507_v32 = vmul.f32 1.442695, %v506_v31 }
 0x335   : > { %1313 = vpow2.f32 %v507_v32  ;;  %v768_v32 = vld [vmem:[#allocation7 + $0x8] sm:$0xf] }
 0x337   : > { %v1312_v33 = vpop.eup %1311 }
 0x338   : > { %v396_v34 = vsel %vm343_vm2, %v1312_v33, 0.0 }
 0x339   : > { %397 = vadd.xlane.f32.xlu0 %v396_v34 }
 0x33f   : > { %v1314_v35 = vpop.eup %1313 }
 0x340   : > { %v509_v36 = vsel %vm343_vm2, %v1314_v35, 0.0 }
 0x341   : > { %510 = vadd.xlane.f32.xlu1 %v509_v36 }
 0x34f   : > { %402 = vrot.lane.b32.xlu0 %v1731_v10, %s1495_s28 }
 0x352   : > { %515 = vrot.lane.b32.xlu1 %v1731_v10, %s1496_s7  ;;  %s1819_s7 = scalar_lea.hbm %s1869_s5, %s1117_s26 }
 0x353   : > { %657 = vrot.lane.b32.xlu0 %v1731_v10, %s1497_s6  ;;  %s1503_s6 = smov [#allocation8]  }
 0x356   : > { %659 = vrot.lane.b32.xlu1 %v1731_v10, %s1498_s30  ;;  %s1417_s30 = sshll.u32 %s1503_s6, 4  ;;  %s1418_s30 = int_to_ptr.vmem [resolvable:$false] %s1417_s30 }
 0x357   : > { %p1420_p7 = scmp.lt.s32.totalorder %s1821_s10, %s1418_s30 }
 0x3c6   : > { %v398_v37 = vpop.xlane.xlu0 %397 }
 0x3c7   : > { %1315 = vrcp.f32 %v398_v37 }
 0x3ca   : > { %v403_v38 = vpop.permute.xlu0 %402 }
 0x3cb   : > { %v409_v39 = vsel %vm407_vm3, %v403_v38, 0 }
 0x3cc   : > { %1162 = vmatpush3.bf16.msra.mxu0 %v409_v39 }
 0x3cd   : > { %1173 = vmatprep.subr.bf16.mxu0 %v1490_v0 }
 0x3ce   : > { %v511_v40 = vpop.xlane.xlu1 %510  ;;  %v658_v2 = vpop.permute.xlu0 %657 }
 0x3cf   : > { %1317 = vrcp.f32 %v511_v40 }
 0x3d1   : > { %v1316_v41 = vpop.eup %1315 }
 0x3d2   : > { %v400_v42 = vmul.f32 %v1316_v41, %v1312_v33  ;;  %v516_v43 = vpop.permute.xlu1 %515  ;;  %v773_v33 = vsel %vm407_vm3, %v768_v32, 0 }
 0x3d3   : > { %v521_v45 = vsel %vm407_vm3, %v516_v43, 0 }
 0x3d4   : > { %v401_v44 = vpack.c.bf16 %v400_v42, %v400_v42 }
 0x3d6   : > { %1164 = vmatmul.mubr.msk.bf16.vlgmr.msra.gmra.mrb[4].mxu0 %vm343_vm2, %v401_v44  ;;  %v660_v58 = vpop.permute.xlu1 %659 }
 0x3d7   : > { %1174 = vmatpush3.bf16.msra.mxu0 %v521_v45  ;;  %1175 = vmatprep.mubr.msk.bf16.mxu0 %vm1491_vm0, %v1490_v0  ;;  %v665_v63 = vsel %vm343_vm2, %v660_v58, 0 }
 0x3d8   : > { %1185 = vmatprep.subr.bf16.mxu0 %v1490_v0 }
 0x3d9   : > { %v1318_v46 = vpop.eup %1317 }
 0x3da   : > { %v513_v47 = vmul.f32 %v1318_v46, %v1314_v35 }
 0x3dc   : > { %v514_v48 = vpack.c.bf16 %v513_v47, %v513_v47 }
 0x3de   : > { %1176 = vmatmul.mubr.msk.bf16.vlgmr.msra.gmra.mrb[8].mxu0 %vm343_vm2, %v514_v48 }
 0x3df   : > { %1187 = vmatprep.mubr.msk.bf16.mxu0 %vm1491_vm0, %v1490_v0  ;;  %1186 = vmatpush3.bf16.msra.mxu0 %v615_v50  ;;  %v927_v50 = vld [vmem:[#allocation7 + $0xc] sm:$0xf] }
 0x3e0   : > { %1197 = vmatprep.subr.bf16.mxu0 %v1490_v0  ;;  %v932_v51 = vsel %vm407_vm3, %v927_v50, 0 }
 0x4a9   : > { %v445_v53 = vpop.f32.mrb[4].mxu0 }
 0x4aa   : > { %v451_v54 = vpack.c.bf16 %v445_v53, %v445_v53  ;;  %v1165_v55 = vpop.f32.mrb[5].mxu0 }
 0x4ab   : > { %v448_v56 = vpop.f32.mrb[6].mxu0 }
 0x4ac   : > { %v1166_v57 = vpop.f32.mrb[7].mxu0  ;;  %1188 = vmatmul.mubr.msk.bf16.vlgmr.msra.gmra.mrb[12].mxu0 %vm343_vm2, %v451_v54 }
 0x4ad   : > { %1199 = vmatprep.mubr.msk.bf16.mxu0 %vm1491_vm0, %v1490_v0 }
 0x4b1   : > { %v557_v59 = vpop.f32.mrb[8].mxu0 }
 0x4b2   : > { %v563_v60 = vpack.c.bf16 %v557_v59, %v557_v59  ;;  %v1177_v61 = vpop.f32.mrb[9].mxu0 }
 0x4b3   : > { %v560_v62 = vpop.f32.mrb[10].mxu0 }
 0x4b4   : > { %v1178_v1 = vpop.f32.mrb[11].mxu0  ;;  %1182 = vmatmul.mubr.msk.bf16.vlgmr.msra.gmra.mrb[8].mxu1 %vm343_vm2, %v563_v60 }
 0x4b5   : > { %1192 = vmatpush3.bf16.xpose.msra.mxu1 %v665_v63  ;;  %1193 = vmatprep.mubr.msk.bf16.mxu1 %vm1491_vm0, %v1490_v0 }
 0x4b6   : > { %1203 = vmatprep.subr.bf16.mxu1 %v1490_v0 }
 0x4bc   : > { %1194 = vmatmul.mubr.msk.bf16.vlgmr.msra.gmra.mrb[12].mxu1 %vm343_vm2, %v658_v2 }
 0x4bd   : > { %1205 = vmatprep.mubr.msk.bf16.mxu1 %vm1491_vm0, %v1490_v0  ;;  %1204 = vmatpush3.bf16.msra.mxu1 %v773_v33 }
 0x4be   : > { %1215 = vmatprep.subr.bf16.mxu1 %v1490_v0 }
 0x57f   : > { %v651_v3 = vpop.f32.mrb[12].mxu0 }
 0x580   : > { %v1189_v4 = vpop.f32.mrb[13].mxu0 }
 0x581   : > { %v654_v5 = vpop.f32.mrb[14].mxu0 }
 0x582   : > { %v1190_v6 = vpop.f32.mrb[15].mxu0 }
 0x587   : > { %v605_v7 = vpop.f32.mrb[8].mxu1 }
 0x588   : > { %v1780_v8 = vadd.f32 %v651_v3, %v605_v7  ;;  %v1183_v9 = vpop.f32.mrb[9].mxu1  ;;  %v1115_v3 = vld [vmem:[%s1868_s4] ss:$0 sm:$0xff] }
 0x589   : > { %v608_v11 = vpop.f32.mrb[10].mxu1 }
 0x58a   : > { %v1184_v12 = vpop.f32.mrb[11].mxu1 }
 0x58f   : > { %v701_v13 = vpop.f32.mrb[12].mxu1 }
 0x590   : > { %v1195_v14 = vpop.f32.mrb[13].mxu1  ;;  %v707_v15 = vsel %vm343_vm2, %v701_v13, -inf }
 0x591   : > { %708 = vmax.xlane.f32.xlu1 %v707_v15  ;;  %v704_v16 = vpop.f32.mrb[14].mxu1 }
 0x592   : > { %v1196_v17 = vpop.f32.mrb[15].mxu1 }
 0x5a2   : > { %818 = vrot.lane.b32.xlu1 %v1731_v10, %s1499_s15  ;;  %s1419_s15 = scalar_lea.vmem %s1418_s30, 256 }
 0x5a3   : > { %p1421_p9 = scmp.lt.s32.totalorder %s1419_s15, %s1413_s13 }
 0x5a5   : > { %p1422_p12 = por %p1421_p9, %p1420_p7 }
 0x5a6   : > { %816 = vrot.lane.b32.xlu1 %v1731_v10, %s1500_s16 }
 0x5a7   : > { %p1423_p2 = pnand %p1422_p12, %p1416_p3 }
 0x61e   : > { %v709_v18 = vpop.xlane.xlu1 %708 }
 0x61f   : > { %v710_v19 = vsub.f32 %v701_v13, %v709_v18 }
 0x621   : > { %v711_v20 = vmul.f32 1.442695, %v710_v19 }
 0x622   : > { %v819_v28 = vpop.permute.xlu1 %818 }
 0x623   : > { %1319 = vpow2.f32 %v711_v20  ;;  %v824_v30 = vsel %vm343_vm2, %v819_v28, 0 }
 0x626   : > { %v817_v31 = vpop.permute.xlu1 %816 }
 0x62d   : > { %v1320_v21 = vpop.eup %1319 }
 0x62e   : > { %v713_v22 = vsel %vm343_vm2, %v1320_v21, 0.0 }
 0x62f   : > { %714 = vadd.xlane.f32.xlu0 %v713_v22 }
 0x645   : > { %719 = vrot.lane.b32.xlu0 %v1731_v10, %s1501_s9 }
 0x6bc   : > { %v715_v23 = vpop.xlane.xlu0 %714 }
 0x6bd   : > { %1321 = vrcp.f32 %v715_v23 }
 0x6c0   : > { %v720_v24 = vpop.permute.xlu0 %719 }
 0x6c1   : > { %v725_v25 = vsel %vm407_vm3, %v720_v24, 0 }
 0x6c2   : > { %1198 = vmatpush3.bf16.msra.mxu0 %v725_v25 }
 0x6c3   : > { %1209 = vmatprep.subr.bf16.mxu0 %v1490_v0 }
 0x6c7   : > { %v1322_v26 = vpop.eup %1321 }
 0x6c8   : > { %v717_v27 = vmul.f32 %v1322_v26, %v1320_v21 }
 0x6ca   : > { %v718_v29 = vpack.c.bf16 %v717_v27, %v717_v27 }
 0x6cc   : > { %1200 = vmatmul.mubr.msk.bf16.vlgmr.msra.gmra.mrb[16].mxu0 %vm343_vm2, %v718_v29 }
 0x6cd   : > { %1210 = vmatpush3.bf16.xpose.msra.mxu0 %v824_v30  ;;  %1211 = vmatprep.mubr.msk.bf16.mxu0 %vm1491_vm0, %v1490_v0 }
 0x6ce   : > { %1221 = vmatprep.subr.bf16.mxu0 %v1490_v0 }
 0x6d4   : > { %1212 = vmatmul.mubr.msk.bf16.vlgmr.msra.gmra.mrb[20].mxu0 %vm343_vm2, %v817_v31 }
 0x6d5   : > { %1223 = vmatprep.mubr.msk.bf16.mxu0 %vm1491_vm0, %v1490_v0  ;;  %1222 = vmatpush3.bf16.msra.mxu0 %v932_v51 }
 0x79f   : > { %v761_v34 = vpop.f32.mrb[16].mxu0 }
 0x7a0   : > { %v767_v35 = vpack.c.bf16 %v761_v34, %v761_v34  ;;  %v1201_v36 = vpop.f32.mrb[17].mxu0 }
 0x7a1   : > { %v764_v37 = vpop.f32.mrb[18].mxu0 }
 0x7a2   : > { %v1202_v38 = vpop.f32.mrb[19].mxu0  ;;  %1206 = vmatmul.mubr.msk.bf16.vlgmr.msra.gmra.mrb[16].mxu1 %vm343_vm2, %v767_v35 }
 0x7a3   : > { %1217 = vmatprep.mubr.msk.bf16.mxu1 %vm1491_vm0, %v1490_v0 }
 0x7a7   : > { %v860_v39 = vpop.f32.mrb[20].mxu0 }
 0x7a8   : > { %v1213_v40 = vpop.f32.mrb[21].mxu0  ;;  %v866_v41 = vsel %vm343_vm2, %v860_v39, -inf }
 0x7a9   : > { %867 = vmax.xlane.f32.xlu0 %v866_v41  ;;  %v863_v42 = vpop.f32.mrb[22].mxu0 }
 0x7aa   : > { %v1214_v43 = vpop.f32.mrb[23].mxu0 }
 0x7bf   : > { %878 = vrot.lane.b32.xlu0 %v1731_v10, %s1502_s29 }
 0x836   : > { %v868_v44 = vpop.xlane.xlu0 %867 }
 0x837   : > { %v869_v45 = vsub.f32 %v860_v39, %v868_v44 }
 0x839   : > { %v870_v46 = vmul.f32 1.442695, %v869_v45 }
 0x83a   : > { %v879_v47 = vpop.permute.xlu0 %878 }
 0x83b   : > { %1323 = vpow2.f32 %v870_v46  ;;  %v884_v48 = vsel %vm407_vm3, %v879_v47, 0 }
 0x83c   : > { %1216 = vmatpush3.bf16.msra.mxu1 %v884_v48 }
 0x845   : > { %v1324_v49 = vpop.eup %1323 }
 0x846   : > { %v872_v0 = vsel %vm343_vm2, %v1324_v49, 0.0 }
 0x847   : > { %873 = vadd.xlane.f32.xlu1 %v872_v0 }
 0x875   : > { %v809_v52 = vpop.f32.mrb[16].mxu1 }
 0x876   : > { %v815_v53 = vadd.f32 %v809_v52, %v1780_v8  ;;  %v1207_v10 = vpop.f32.mrb[17].mxu1 }
 0x877   : > { %v812_v54 = vpop.f32.mrb[18].mxu1 }
 0x878   : > { %v1208_v55 = vpop.f32.mrb[19].mxu1 }
 0x8d4   : > { %v874_v56 = vpop.xlane.xlu1 %873 }
 0x8d5   : > { %1325 = vrcp.f32 %v874_v56 }
 0x8df   : > { %v1326_v57 = vpop.eup %1325 }
 0x8e0   : > { %v876_v58 = vmul.f32 %v1326_v57, %v1324_v49 }
 0x8e2   : > { %v877_v59 = vpack.c.bf16 %v876_v58, %v876_v58 }
 0x8e4   : > { %1218 = vmatmul.mubr.msk.bf16.vlgmr.msra.gmra.mrb[20].mxu1 %vm343_vm2, %v877_v59 }
 0x9b7   : > { %v920_v60 = vpop.f32.mrb[20].mxu1 }
 0x9b8   : > { %v926_v61 = vpack.c.bf16 %v920_v60, %v920_v60  ;;  %v1219_v62 = vpop.f32.mrb[21].mxu1 }
 0x9b9   : > { %v923_v63 = vpop.f32.mrb[22].mxu1 }
 0x9ba   : > { %v1220_v1 = vpop.f32.mrb[23].mxu1  ;;  %1224 = vmatmul.mubr.msk.bf16.vlgmr.msra.gmra.mrb[24].mxu0 %vm343_vm2, %v926_v61 }
 0xa8d   : > { %v968_v2 = vpop.f32.mrb[24].mxu0 }
 0xa8e   : > { %v974_v4 = vadd.f32 %v968_v2, %v815_v53  ;;  %v1225_v5 = vpop.f32.mrb[25].mxu0 }
 0xa8f   : > { %v971_v6 = vpop.f32.mrb[26].mxu0 }
 0xa90   : > { %v982_v7 = vadd.f32 %v1115_v3, %v974_v4  ;;  %v1226_v8 = vpop.f32.mrb[27].mxu0 }
 0xa92   : > { %983 = vst.msk [vmem:[%s268_s8] sm:$0xff] %vm295_vm1, %v982_v7 }
 0xa93   : > { %1426 = shalt.err (!%p1423_p2)
}
 0xa94   : > { %s1427_s12 = scalar_lea.hbm %s1819_s7, 128  ;;  %s1431_s29 = scalar_lea.hbm %s1869_s5, 256 }
 0xa95   : > { %p1428_p13 = scmp.ne.s32.totalorder %s1819_s7, %s1427_s12  ;;  %p1432_p4 = scmp.lt.u32.totalorder %s1819_s7, %s1869_s5 }
 0xa96   : > { %p1433_p5 = scmp.lt.u32.totalorder %s1431_s29, %s1427_s12  ;;  %p1435_p11 = scmp.lt.u32.totalorder %s1427_s12, %s1819_s7 }
 0xa97   : > { %p1429_p6 = pnand %p1428_p13, %p1883_p0 }
 0xa98   : > { %p1434_p8 = por %p1433_p5, %p1432_p4 }
 0xa99   : > { %p1430_p10 = pneg %p1429_p6 }
 0xa9a   : > { %p1436_p1 = por %p1435_p11, %p1434_p8 }
 0xa9c   : > { %p1437_p3 = pnand %p1436_p1, %p1430_p10 }
 0xa9e   : > { %1440 = shalt.err (!%p1437_p3)
}
 0xa9f   : > { %1237 = dma.vmem_to_hbm [thread:$0]  (%p1883_p0), %s1821_s10, 128, %s1819_s7, %s985_s22  }
 0xaa0 PF: > { %s1010_s26 = sand.u32 1, %s1471_s18   ;;  %p1884_p7 = scmp.ne.s32.totalorder %s1874_s25, 0 }
 0xaa1   : > { %p1885_p9 = scmp.ge.s32.totalorder %s1483_s21, 2  ;;  %s1011_s8 = scalar_lea.sflag [#allocation4], %s1010_s26 }
 0xaa3   : > { %p1251_p12 = pnand %p1885_p9, %p1884_p7 }
 0xaa5   : > { %1466 = dma.done.wait (!%p1251_p12), %s1011_s8, 128  }
 0xaa6   : > { %1468 = vsyncadd (!%p1251_p12), %s1011_s8, 4294967168  ;;  %p19_p2 = scmp.ge.s32.totalorder %s1644_s14, 4   ;;  %s1886_s18 = smov %s1475_s19 }
 0xaa7   : > { %s1887_s19 = smov %s1479_s20  ;;  %s1888_s20 = smov %s1660_s27 }
 0xaa8   : > { %s1889_s21 = smov %s1644_s14  ;;  %21 = sbr.rel (!%p19_p2) target bundleno = 6 (0x6), region = 93 }
 0xaaf   :  { %1016 = vsyncpa [#allocation3], 1 }
 0xab0   :  { %1018 = vsyncpa [#allocation3 + $0x1], 1 }
 0xab1   :  { %1019 = vsyncpa [#allocation6], 1 }
 0xab2   :  { %1020 = vsyncpa [#allocation4], 1 }
 0xab3   :  { %1022 = vsyncpa [#allocation4 + $0x1], 1 }

</bundles_post_ra>
